<compile_context>
chip_gen: v7x
topology: tpu7x:2x2x1
jax: 0.10.0
libtpu: 0.0.40
codegen_flags: <defaults>
</compile_context>

<pallas_src>
import functools

import jax
import jax.numpy as jnp
from jax import lax
from jax.experimental import pallas as pl
from jax.experimental.pallas import tpu as pltpu


def _last_token_sample_kernel(logits_ref, noise_ref, *out_refs, with_probs):
    """Fused last-token softmax + categorical sample (Gumbel-max).

    logits_ref: (B, V) VMEM tile — last-step logits, native dtype (bf16 demo).
    noise_ref:  (B, V) f32 Gumbel(0, 1) noise.
    out_refs:   (probs_ref, idx_ref) if with_probs else (idx_ref,).
    """
    if with_probs:
        probs_ref, idx_ref = out_refs
    else:
        (idx_ref,) = out_refs

    x = logits_ref[...].astype(jnp.float32)                      # (B, V) f32 on-chip

    if with_probs:
        # Numerically-stable softmax over the vocab (lane) axis.
        # Exact divide (not pl.reciprocal(approx=True)): the approximate
        # reciprocal's ~1e-4 relative error breaks sum(probs)==1 at V=65.
        m = jnp.max(x, axis=-1, keepdims=True)
        e = jnp.exp(x - m)
        denom = jnp.sum(e, axis=-1, keepdims=True)
        probs_ref[...] = e / denom

    # torch.multinomial(softmax(x), 1)  ==  argmax(x + Gumbel noise).
    # (Row-wise shift/normalizer is constant per row -> argmax unchanged, so no
    #  exp/log is needed on the sampling path.)
    score = x + noise_ref[...]                                   # (B, V)
    V = score.shape[-1]
    col = lax.broadcasted_iota(jnp.int32, score.shape, 1)
    best = jnp.max(score, axis=-1, keepdims=True)
    # argmax with lowest-index tie-break (matches jnp.argmax semantics).
    idx = jnp.min(jnp.where(score == best, col, V), axis=-1, keepdims=True)
    idx_ref[...] = idx.astype(jnp.int32)


@functools.partial(jax.jit, static_argnames=("return_probs",))
def generate_step(last_logits, noise, return_probs=False):
    """One AttentionModel.generate() step on last-token logits (B, V).

    Returns sampled idx (B, 1) int32, plus probs over the last-token logits
    when return_probs=True (used only for verification; the decode loop runs
    the idx-only variant so there is no (B, V) f32 writeback per step).
    """
    B, V = last_logits.shape
    kernel = functools.partial(_last_token_sample_kernel, with_probs=return_probs)

    vmem_spec = pl.BlockSpec(memory_space=pltpu.MemorySpace.VMEM)  # full-array block
    idx_shape = jax.ShapeDtypeStruct((B, 1), jnp.int32)
    if return_probs:
        out_shape = (jax.ShapeDtypeStruct((B, V), jnp.float32), idx_shape)
        out_specs = (vmem_spec, vmem_spec)
    else:
        out_shape = idx_shape
        out_specs = vmem_spec

    # No grid: single invocation, whole (tiny) operands resident in VMEM.
    out = pl.pallas_call(
        kernel,
        out_shape=out_shape,
        in_specs=[vmem_spec, vmem_spec],
        out_specs=out_specs,
    )(last_logits, noise)

    if return_probs:
        probs, idx = out
        return probs, idx
    return out


def make_generate(forward_fn, context_length, vocab_size, max_new_tokens):
    """Mirror of AttentionModel.generate() with a fixed-shape token buffer."""

    @jax.jit
    def generate(seqs, key):
        B, T0 = seqs.shape
        if T0 < context_length:
            # TODO(synk): prompts shorter than context_length would need a
            # ragged window; the demo (and typical setup) has T0 >= ctx.
            raise ValueError("prompt must be at least context_length tokens")
        total = T0 + max_new_tokens
        buf = jnp.zeros((B, total), seqs.dtype)
        buf = lax.dynamic_update_slice(buf, seqs, (0, 0))

        def body(step, carry):
            buf, key = carry
            cur_len = T0 + step
            start = cur_len - context_length
            seqs_eff = lax.dynamic_slice(buf, (0, start), (B, context_length))
            logits = forward_fn(seqs_eff)                 # (B, ctx, V) native dtype
            last = logits[:, -1, :]                       # fuses with forward in XLA
            key, sub = jax.random.split(key)
            noise = jax.random.gumbel(sub, (B, vocab_size), dtype=jnp.float32)
            idx_next = generate_step(last, noise)         # (B, 1) int32 only
            buf = lax.dynamic_update_slice(buf, idx_next.astype(buf.dtype),
                                           (0, cur_len))
            return buf, key

        buf, _ = lax.fori_loop(0, max_new_tokens, body, (buf, key))
        return buf

    return generate


if __name__ == "__main__":
    B, T, V = 2, 8, 65            # batch=2, context_length=8, shakespeare char vocab=65
    context_length = T
    max_new_tokens = 4

    key = jax.random.PRNGKey(0)
    k_tab, k_seq, k_noise, k_gen = jax.random.split(key, 4)

    # Deterministic toy "forward": per-token logits lookup table in bf16 (the
    # model's native dtype); the kernel casts to f32 on-chip.  Demo scaffolding
    # only — the reference forward() is abstract (see header TODOs).
    table = jax.random.normal(k_tab, (V, V), dtype=jnp.float32).astype(jnp.bfloat16)

    def forward_fn(seqs_eff):
        return table[seqs_eff]                            # (B, T_eff, V) bf16

    seqs = jax.random.randint(k_seq, (B, T), 0, V, dtype=jnp.int32)

    # --- Single-step correctness check against a pure-JAX reference ---------
    logits = forward_fn(seqs[:, -context_length:])
    last = logits[:, -1, :]                               # same slice generate() takes
    noise = jax.random.gumbel(k_noise, (B, V), dtype=jnp.float32)
    probs, idx_next = generate_step(last, noise, return_probs=True)
    probs, idx_next = jax.block_until_ready((probs, idx_next))

    last_f32 = last.astype(jnp.float32)
    ref_probs = jax.nn.softmax(last_f32, axis=-1)
    assert jnp.allclose(probs, ref_probs, atol=1e-4, rtol=1e-4), "softmax mismatch"
    assert jnp.allclose(jnp.sum(probs, axis=-1), 1.0, atol=1e-3), "probs do not sum to 1"

    ref_idx = jnp.argmax(last_f32 + noise, axis=-1, keepdims=True).astype(jnp.int32)
    assert jnp.array_equal(idx_next, ref_idx), "Gumbel-max sample mismatch"
    assert bool(jnp.all((idx_next >= 0) & (idx_next < V))), "sampled index out of range"

    # --- Full generate loop (semantics of AttentionModel.generate()) --------
    generate = make_generate(forward_fn, context_length, V, max_new_tokens)
    out = generate(seqs, k_gen)
    out = jax.block_until_ready(out)
    assert out.shape == (B, T + max_new_tokens)
    assert jnp.array_equal(out[:, :T], seqs), "prompt tokens were modified"
    assert bool(jnp.all((out >= 0) & (out < V))), "generated token out of range"

    print("KERNEL_OK")
</pallas_src>

<mosaic_0001>
module attributes {stable_mosaic.version = 11 : i64} {
  func.func @_last_token_sample_kernel(%arg0: memref<2x65xbf16, #tpu.memory_space<vmem>>, %arg1: memref<2x65xf32, #tpu.memory_space<vmem>>, %arg2: memref<2x65xf32, #tpu.memory_space<vmem>>, %arg3: memref<2x1xi32, #tpu.memory_space<vmem>>) attributes {dimension_semantics = [], scalar_prefetch = 0 : i64, scratch_operands = 0 : i64, tpu.core_type = #tpu.core_type<tc>} {
    %c0 = arith.constant 0 : index
    %c0_0 = arith.constant 0 : index
    %0 = vector.load %arg0[%c0, %c0_0] : memref<2x65xbf16, #tpu.memory_space<vmem>>, vector<2x65xbf16>
    %1 = arith.extf %0 : vector<2x65xbf16> to vector<2x65xf32>
    %cst = arith.constant dense<0xFF800000> : vector<2xf32>
    %2 = vector.multi_reduction <maximumf>, %1, %cst [1] : vector<2x65xf32> to vector<2xf32>
    %3 = vector.shape_cast %2 : vector<2xf32> to vector<2x1xf32>
    %4 = vector.broadcast %3 : vector<2x1xf32> to vector<2x65xf32>
    %5 = arith.subf %1, %4 : vector<2x65xf32>
    %6 = math.exp %5 : vector<2x65xf32>
    %cst_1 = arith.constant dense<0.000000e+00> : vector<2xf32>
    %7 = vector.multi_reduction <add>, %6, %cst_1 [1] : vector<2x65xf32> to vector<2xf32>
    %8 = vector.shape_cast %7 : vector<2xf32> to vector<2x1xf32>
    %9 = vector.broadcast %8 : vector<2x1xf32> to vector<2x65xf32>
    %10 = arith.divf %6, %9 : vector<2x65xf32>
    %c0_2 = arith.constant 0 : index
    %c0_3 = arith.constant 0 : index
    %11 = vector.load %arg2[%c0_2, %c0_3] : memref<2x65xf32, #tpu.memory_space<vmem>>, vector<2x65xf32>
    tpu.vector_store %arg2[%c0_2, %c0_3], %10 {strides = array<i32>} : memref<2x65xf32, #tpu.memory_space<vmem>>, vector<2x65xf32>,
    %c0_4 = arith.constant 0 : index
    %c0_5 = arith.constant 0 : index
    %12 = vector.load %arg1[%c0_4, %c0_5] : memref<2x65xf32, #tpu.memory_space<vmem>>, vector<2x65xf32>
    %13 = arith.addf %1, %12 : vector<2x65xf32>
    %14 = tpu.iota {dimensions = array<i32: 1>} : vector<2x65xi32>
    %cst_6 = arith.constant dense<0xFF800000> : vector<2xf32>
    %15 = vector.multi_reduction <maximumf>, %13, %cst_6 [1] : vector<2x65xf32> to vector<2xf32>
    %16 = vector.shape_cast %15 : vector<2xf32> to vector<2x1xf32>
    %17 = vector.broadcast %16 : vector<2x1xf32> to vector<2x65xf32>
    %18 = arith.cmpf oeq, %13, %17 : vector<2x65xf32>
    %c65_i32 = arith.constant 65 : i32
    %19 = vector.broadcast %c65_i32 : i32 to vector<2x65xi32>
    %20 = arith.select %18, %14, %19 : vector<2x65xi1>, vector<2x65xi32>
    %cst_7 = arith.constant dense<2147483647> : vector<2xi32>
    %21 = vector.multi_reduction <minsi>, %20, %cst_7 [1] : vector<2x65xi32> to vector<2xi32>
    %22 = vector.shape_cast %21 : vector<2xi32> to vector<2x1xi32>
    %c0_8 = arith.constant 0 : index
    %c0_9 = arith.constant 0 : index
    %23 = vector.load %arg3[%c0_8, %c0_9] : memref<2x1xi32, #tpu.memory_space<vmem>>, vector<2x1xi32>
    tpu.vector_store %arg3[%c0_8, %c0_9], %22 {strides = array<i32>} : memref<2x1xi32, #tpu.memory_space<vmem>>, vector<2x1xi32>,
    return
  }
}

</mosaic_0001>

<bundles_post_ra>
// kernel: generate_step.1
= control target key start
LH: loop header
LB: loop body
LE: loop exit
PB: predicated region body
PF: predicated region fallthrough
CT: control target
= control target key end

     0   :  { %9 = vsyncpa [#allocation3], 0  ;;  %s197_s0 = inlined_call_operand.hbm [shape: bf16[2,65], index: 0, kind: input, shape index: {}]   ;;  %s198_s1 = inlined_call_operand.vmem [shape: f32[2,65], index: 1, kind: input, shape index: {}]   ;;  %s199_s2 = inlined_call_operand.hbm [shape: f32[2,65], index: 2, kind: output, shape index: {0}]   ;;  %s200_s3 = inlined_call_operand.vmem [shape: s32[2,1], index: 3, kind: output, shape index: {1}]  }
   0x1   :  { %10 = vsyncpa [#allocation4], 0  ;;  %s140_s12 = smov [#allocation2]   ;;  %s92_s16 = scalar_lea.hbm %s197_s0, 16 }
   0x2   :  { %s17_s13 = sshll.u32 %s140_s12, 4  ;;  %p93_p0 = scmp.ne.s32.totalorder %s197_s0, %s92_s16  ;;  %s18_s13 = int_to_ptr.vmem [resolvable:$true] %s17_s13 }
   0x3   :  { %p96_p1 = scmp.lt.u32.totalorder %s92_s16, %s197_s0 }
   0x5   :  { %p98_p2 = pnand %p96_p1, %p93_p0 }
   0x7   :  { %101 = shalt.err (!%p98_p2)
}
   0x8   :  { %s102_s21 = scalar_lea.vmem %s18_s13, 16  ;;  %s106_s22 = scalar_lea.vmem %s18_s13, 32 }
   0x9   :  { %p103_p3 = scmp.ne.s32.totalorder %s18_s13, %s102_s21  ;;  %p107_p4 = scmp.lt.s32.totalorder %s18_s13, %s18_s13 }
   0xa   :  { %p108_p5 = scmp.lt.s32.totalorder %s106_s22, %s102_s21 }
   0xc   :  { %p109_p6 = por %p108_p5, %p107_p4 }
   0xe   :  { %p110_p7 = pnand %p109_p6, %p103_p3 }
  0x10   :  { %113 = shalt.err (!%p110_p7)
}
  0x11   :  { %20 = dma.hbm_to_vmem [thread:$0]  %s197_s0, 16, %s18_s13, [#allocation3]  }
  0x12   :  { %136 = dma.done.wait [#allocation3], 16  }
  0x13   :  { %137 = vsyncadd [#allocation3], 4294967280  ;;  %v26_v0 = vld [vmem:[#allocation2] sm:$0x1]  ;;  %v41_v1 = vld [vmem:[%s198_s1] sm:$0x3]  ;;  %v43_v6 = vlaneseq }
  0x14   :  { %v27_v2 = vunpack.c.l.bf16 %v26_v0  ;;  %vm28_vm0 = vcmask 525312   ;;  %s141_s0 = smov [#allocation5]  }
  0x15   :  { %v44_v7 = vand.u32 127, %v43_v6  ;;  %s73_s1 = sshll.u32 %s141_s0, 4  ;;  %s74_s1 = int_to_ptr.vmem [resolvable:$true] %s73_s1 }
  0x16   :  { %v42_v3 = vadd.f32 %v41_v1, %v27_v2  ;;  %v29_v5 = vsel %vm28_vm0, %v27_v2, -inf  ;;  %s114_s27 = scalar_lea.vmem %s74_s1, 32  ;;  %p119_p9 = scmp.lt.s32.totalorder %s74_s1, %s74_s1 }
  0x17   :  { %p115_p8 = scmp.ne.s32.totalorder %s74_s1, %s114_s27  ;;  %p120_p10 = scmp.lt.s32.totalorder %s114_s27, %s114_s27 }
  0x18   :  { %v45_v4 = vsel %vm28_vm0, %v42_v3, -inf }
  0x19   :  { %46 = vmax.xlane.f32.xlu0 %v45_v4  ;;  %p121_p11 = por %p120_p10, %p119_p9 }
  0x1b   :  { %p122_p12 = pnand %p121_p11, %p115_p8 }
  0x1d   :  { %30 = vmax.xlane.f32.xlu0 %v29_v5 }
  0xa6   :  { %v47_v8 = vpop.xlane.xlu0 %46 }
  0xa7   :  { %vm48_vm1 = vcmp.eq.f32.partialorder %v42_v3, %v47_v8 }
  0xa8   :  { %v49_v9 = vsel %vm48_vm1, %v44_v7, 65 }
  0xa9   :  { %v50_v10 = vsel %vm28_vm0, %v49_v9, 2147483647 }
  0xaa   :  { %v31_v11 = vpop.xlane.xlu0 %30  ;;  %v52_v12 = vshra.s32 %v50_v10, 16  ;;  %v51_v18 = vand.u32 65535, %v50_v10 }
  0xab   :  { %v32_v13 = vsub.f32 %v27_v2, %v31_v11 }
  0xac   :  { %v54_v14 = vcvt.s32.f32 %v52_v12  ;;  %v53_v20 = vcvt.s32.f32 %v51_v18 }
  0xad   :  { %v33_v15 = vmul.f32 1.442695, %v32_v13 }
  0xae   :  { %55 = vmin.xlane.f32.xlu1 %v54_v14 }
  0xaf   :  { %88 = vpow2.f32 %v33_v15 }
  0xb9   :  { %v89_v16 = vpop.eup %88 }
  0xba   :  { %v35_v17 = vsel %vm28_vm0, %v89_v16, 0.0 }
  0xbb   :  { %36 = vadd.xlane.f32.xlu1 %v35_v17 }
 0x13b   :  { %v56_v19 = vpop.xlane.xlu1 %55 }
 0x13c   :  { %vm57_vm2 = vcmp.eq.f32.partialorder %v54_v14, %v56_v19 }
 0x13d   :  { %v58_v21 = vsel %vm57_vm2, %v53_v20, inf }
 0x13e   :  { %59 = vmin.xlane.f32.xlu0 %v58_v21 }
 0x148   :  { %v37_v22 = vpop.xlane.xlu1 %36 }
 0x149   :  { %90 = vrcp.f32 %v37_v22 }
 0x153   :  { %v91_v23 = vpop.eup %90 }
 0x154   :  { %v39_v24 = vmul.f32 %v91_v23, %v89_v16 }
 0x156   :  { %40 = vst.msk [vmem:[#allocation5] sm:$0x3] %vm28_vm0, %v39_v24 }
 0x157   :  { %125 = shalt.err (!%p122_p12)
}
 0x158   :  { %s126_s30 = scalar_lea.hbm %s199_s2, 32 }
 0x159   :  { %p127_p13 = scmp.ne.s32.totalorder %s199_s2, %s126_s30  ;;  %p130_p0 = scmp.lt.u32.totalorder %s126_s30, %s199_s2 }
 0x15b   :  { %p132_p1 = pnand %p130_p0, %p127_p13 }
 0x15d   :  { %135 = shalt.err (!%p132_p1)
}
 0x15e   :  { %76 = dma.vmem_to_hbm [thread:$0]  %s74_s1, 32, %s199_s2, [#allocation4]   ;;  %v62_v25 = vcvt.f32.s32 %v56_v19  ;;  %vm65_vm3 = vcmask 1024  }
 0x160   :  { %v63_v27 = vshll.u32 %v62_v25, 16 }
 0x1cb   :  { %v60_v26 = vpop.xlane.xlu0 %59 }
 0x1cc   :  { %v61_v28 = vcvt.f32.s32 %v60_v26 }
 0x1ce   :  { %v64_v29 = vadd.s32 %v63_v27, %v61_v28 }
 0x1d0   :  { %66 = vst.msk [vmem:[%s200_s3] sm:$0x3] %vm65_vm3, %v64_v29 }
 0x1d1   :  { %138 = dma.done.wait [#allocation4], 32  }
 0x1d2   :  { %139 = vsyncadd [#allocation4], 4294967264 }
 0x1d3   :  { %84 = vsyncpa [#allocation3], 1 }
 0x1d4   :  { %85 = vsyncpa [#allocation4], 1 }

</bundles_post_ra>
